<compile_context>
chip_gen: v7x
topology: tpu7x:2x2x1
jax: 0.10.0
libtpu: 0.0.40
codegen_flags: <defaults>
</compile_context>

<pallas_src>
import numpy as np
import jax
import jax.numpy as jnp
from jax.experimental import pallas as pl
from jax.experimental.pallas import tpu as pltpu


def _round_up(a, m):
    return (a + m - 1) // m * m


def _vmem_capacity_bytes():
    """Physical VMEM per TensorCore; falls back to the smallest known (v7x)."""
    try:
        info = pltpu.get_tpu_info()
        for name in ("vmem_capacity_bytes", "vmem_size_bytes", "vmem_bytes"):
            v = getattr(info, name, None)
            if v:
                return int(v)
    except Exception:
        pass
    return 64 << 20


def _spec(shape, index_map, n_buffers=None):
    """BlockSpec, optionally with an explicit buffer count (single-buffer for
    constant-index resident operands).  Falls back if pipeline_mode/Buffered
    is unavailable in this jax version."""
    if n_buffers is None:
        return pl.BlockSpec(shape, index_map)
    try:
        return pl.BlockSpec(shape, index_map, pipeline_mode=pl.Buffered(n_buffers))
    except Exception:
        return pl.BlockSpec(shape, index_map)


def mlp_readout_kernel(x_ref, w1_ref, b1_ref, w2_ref, b2_ref, o_ref, acc_ref):
    """Grid step (row-tile i, hidden-chunk k):
         acc += relu(x_i @ W1[:, k] + b1[k]) @ W2[k, :]
       f32 MXU accumulation; b2 added and output stored at the last chunk."""
    k = pl.program_id(1)

    @pl.when(k == 0)
    def _():
        acc_ref[...] = jnp.zeros_like(acc_ref)

    x = x_ref[...].astype(w1_ref.dtype)            # cast once, in VMEM
    h = jnp.dot(x, w1_ref[...], preferred_element_type=jnp.float32)
    h = jnp.maximum(h + b1_ref[...], 0.0)
    acc_ref[...] += jnp.dot(h.astype(w2_ref.dtype), w2_ref[...],
                            preferred_element_type=jnp.float32)

    @pl.when(k == pl.num_programs(1) - 1)
    def _():
        o_ref[...] = (acc_ref[...] + b2_ref[...]).astype(o_ref.dtype)


def prepare_mlp_readout_params(w1, b1, w2, b2, *, tk=512,
                               weight_dtype=jnp.bfloat16):
    """Pad / cast the static weights ONCE (hoisted out of the per-call path).

    The hidden (reduction) dim is zero-padded to a multiple of the chunk width
    tk, which keeps the chunked accumulation exact (padded hidden units are
    relu(0)=0 and their W2 rows are 0)."""
    in_dim, hidden = w1.shape
    out_dim = w2.shape[1]
    tk_eff = min(_round_up(tk, 128), _round_up(hidden, 128))
    hid_p = _round_up(hidden, tk_eff)
    w1_p = jnp.pad(w1, ((0, 0), (0, hid_p - hidden))).astype(weight_dtype)
    b1_p = jnp.pad(b1, (0, hid_p - hidden)).reshape(1, hid_p).astype(jnp.float32)
    w2_p = jnp.pad(w2, ((0, hid_p - hidden), (0, 0))).astype(weight_dtype)
    b2_p = b2.reshape(1, out_dim).astype(jnp.float32)
    return dict(w1=w1_p, b1=b1_p, w2=w2_p, b2=b2_p,
                in_dim=in_dim, hid_p=hid_p, out_dim=out_dim, tk=tk_eff)


def mlp_readout(x, params, *, tm=512):
    """x: [N, in_dim] -> [N, out_dim].  Rows tiled (parallel), hidden chunked."""
    N, in_dim = x.shape
    assert in_dim == params["in_dim"]
    hid_p, out_dim, tk = params["hid_p"], params["out_dim"], params["tk"]
    w1_p, b1_p, w2_p, b2_p = params["w1"], params["b1"], params["w2"], params["b2"]

    grid_k = hid_p // tk
    x_bytes = x.dtype.itemsize
    out_bytes = x.dtype.itemsize
    w_bytes = np.dtype(w1_p.dtype).itemsize
    # Single-buffer weights only when their index map is constant (one chunk);
    # with multiple hidden chunks keep default double-buffering for overlap.
    w_nbuf = 1 if grid_k == 1 else None
    wbuf = 1 if grid_k == 1 else 2

    # Row tile: multiple of 8; clamped for tiny batches, and split so large
    # batches give >= 2 grid steps (v7x megacore shards the parallel axis).
    tm_cap = _round_up(N, 8)
    if N >= 256:
        tm_cap = _round_up((N + 1) // 2, 8)
    tm_eff = max(8, _round_up(min(tm, tm_cap), 8))

    def vmem_need(tm_):
        return (2 * tm_ * in_dim * x_bytes                       # x tiles (2 bufs)
                + 2 * tm_ * out_dim * out_bytes                  # out tiles (2 bufs)
                + wbuf * (in_dim * tk + tk * out_dim) * w_bytes  # W1 / W2 chunk
                + wbuf * tk * 4 + out_dim * 4                    # b1 chunk, b2
                + tm_ * out_dim * 4                              # f32 acc scratch
                + tm_ * tk * 4)                                  # h intermediate

    # Generation-aware VMEM budget (~75% of physical: ~48 MiB v7x, ~96 MiB
    # v5e/v6e).  Shrink the row tile instead of silently clamping the limit.
    vmem_cap = int(_vmem_capacity_bytes()) * 3 // 4
    while vmem_need(tm_eff) * 3 // 2 + (4 << 20) > vmem_cap and tm_eff > 8:
        tm_eff = max(8, _round_up(tm_eff // 2, 8))
    vmem_limit = int(min(max(vmem_need(tm_eff) * 3 // 2 + (4 << 20), 16 << 20),
                         vmem_cap))
    # TODO(synk): for extremely wide in_dim/out_dim (x/out tiles alone exceed
    # the budget at tm=8) also chunk in_dim / out_dim instead of only shrinking tm.

    grid_m = pl.cdiv(N, tm_eff)

    flops = 2 * N * (in_dim * hid_p + hid_p * out_dim)
    weight_passes = 1 if grid_k == 1 else grid_m
    bytes_accessed = (N * in_dim * x_bytes + N * out_dim * out_bytes
                      + weight_passes * (in_dim * hid_p + hid_p * out_dim) * w_bytes
                      + (hid_p + out_dim) * 4)

    return pl.pallas_call(
        mlp_readout_kernel,
        out_shape=jax.ShapeDtypeStruct((N, out_dim), x.dtype),
        grid_spec=pltpu.PrefetchScalarGridSpec(
            num_scalar_prefetch=0,
            grid=(grid_m, grid_k),
            in_specs=[
                _spec((tm_eff, in_dim), lambda i, k: (i, 0)),            # x row tile
                _spec((in_dim, tk), lambda i, k: (0, k), w_nbuf),        # W1 chunk
                _spec((1, tk), lambda i, k: (0, k), w_nbuf),             # b1 chunk
                _spec((tk, out_dim), lambda i, k: (k, 0), w_nbuf),       # W2 chunk
                _spec((1, out_dim), lambda i, k: (0, 0), 1),             # b2 (resident)
            ],
            out_specs=pl.BlockSpec((tm_eff, out_dim), lambda i, k: (i, 0)),
            scratch_shapes=[pltpu.VMEM((tm_eff, out_dim), jnp.float32)],
        ),
        compiler_params=pltpu.CompilerParams(
            dimension_semantics=("parallel", "arbitrary"),
            vmem_limit_bytes=vmem_limit,
        ),
        cost_estimate=pl.CostEstimate(
            flops=flops, transcendentals=0, bytes_accessed=bytes_accessed),
    )(x, w1_p, b1_p, w2_p, b2_p)


if __name__ == "__main__":
    key = jax.random.PRNGKey(0)
    key1, key2 = jax.random.split(key)

    # --- Case 1: MLPReadout(in_dim=32, out_dim=16, hidden_dim=64).
    #     N=12 exercises the partial (non-multiple-of-8) last row block.
    N, in_dim, hidden_dim, out_dim = 12, 32, 64, 16
    kx, kw1, kb1, kw2, kb2 = jax.random.split(key1, 5)
    x = jax.random.normal(kx, (N, in_dim), dtype=jnp.float32)
    lim1 = 1.0 / jnp.sqrt(in_dim)
    lim2 = 1.0 / jnp.sqrt(hidden_dim)
    w1 = jax.random.uniform(kw1, (in_dim, hidden_dim), jnp.float32, -lim1, lim1)
    b1 = jax.random.uniform(kb1, (hidden_dim,), jnp.float32, -lim1, lim1)
    w2 = jax.random.uniform(kw2, (hidden_dim, out_dim), jnp.float32, -lim2, lim2)
    b2 = jax.random.uniform(kb2, (out_dim,), jnp.float32, -lim2, lim2)

    params = prepare_mlp_readout_params(w1, b1, w2, b2)   # pad / cast ONCE
    out = mlp_readout(x, params)
    jax.block_until_ready(out)
    assert out.shape == (N, out_dim)

    # Reference with the same bf16 operand quantization (f32 accumulation).
    q = lambda a: a.astype(jnp.bfloat16).astype(jnp.float32)
    ref_q = q(jnp.maximum(q(x) @ q(w1) + b1, 0.0)) @ q(w2) + b2
    assert jnp.allclose(out, ref_q, atol=1e-2, rtol=1e-2), (
        float(jnp.max(jnp.abs(out - ref_q))))
    ref_f32 = jnp.maximum(x @ w1 + b1, 0.0) @ w2 + b2
    assert jnp.allclose(out, ref_f32, atol=5e-2, rtol=5e-2)

    # --- Case 2: exercise the hidden-chunk path (grid_k > 1), split row tiles
    #     (>=2 grid steps) and the f32 weight path. hidden=300 @ tk=128 -> 3 chunks.
    N2, hid2 = 260, 300
    kx2, kw3, kb3, kw4, kb4 = jax.random.split(key2, 5)
    lim3 = 1.0 / jnp.sqrt(hid2)
    x2 = jax.random.normal(kx2, (N2, in_dim), dtype=jnp.float32)
    w3 = jax.random.uniform(kw3, (in_dim, hid2), jnp.float32, -lim1, lim1)
    b3 = jax.random.uniform(kb3, (hid2,), jnp.float32, -lim1, lim1)
    w4 = jax.random.uniform(kw4, (hid2, out_dim), jnp.float32, -lim3, lim3)
    b4 = jax.random.uniform(kb4, (out_dim,), jnp.float32, -lim3, lim3)

    params2 = prepare_mlp_readout_params(w3, b3, w4, b4, tk=128,
                                         weight_dtype=jnp.float32)
    out2 = mlp_readout(x2, params2)
    jax.block_until_ready(out2)
    assert out2.shape == (N2, out_dim)
    ref2 = jnp.maximum(x2 @ w3 + b3, 0.0) @ w4 + b4
    assert jnp.allclose(out2, ref2, atol=2e-2, rtol=2e-2), (
        float(jnp.max(jnp.abs(out2 - ref2))))

    print("KERNEL_OK")
</pallas_src>

<mosaic_0001>
module attributes {stable_mosaic.version = 11 : i64} {
  func.func @mlp_readout_kernel(%arg0: i32, %arg1: i32, %arg2: memref<16x32xf32, #tpu.memory_space<vmem>>, %arg3: memref<32x128xbf16, #tpu.memory_space<vmem>>, %arg4: memref<1x128xf32, #tpu.memory_space<vmem>>, %arg5: memref<128x16xbf16, #tpu.memory_space<vmem>>, %arg6: memref<1x16xf32, #tpu.memory_space<vmem>>, %arg7: memref<16x16xf32, #tpu.memory_space<vmem>>, %arg8: memref<16x16xf32, #tpu.memory_space<vmem>>) attributes {dimension_semantics = [#tpu.dimension_semantics<parallel>, #tpu.dimension_semantics<arbitrary>], iteration_bounds = array<i64: 1, 1>, scalar_prefetch = 0 : i64, scratch_operands = 1 : i64, tpu.core_type = #tpu.core_type<tc>, window_params = [{transform_indices = @transform_0, window_bounds = array<i64: 16, 32>}, {pipeline_mode = #tpu.pipeline_mode<synchronous>, transform_indices = @transform_1, window_bounds = array<i64: 32, 128>}, {pipeline_mode = #tpu.pipeline_mode<synchronous>, transform_indices = @transform_2, window_bounds = array<i64: 1, 128>}, {pipeline_mode = #tpu.pipeline_mode<synchronous>, transform_indices = @transform_3, window_bounds = array<i64: 128, 16>}, {pipeline_mode = #tpu.pipeline_mode<synchronous>, transform_indices = @transform_4, window_bounds = array<i64: 1, 16>}, {transform_indices = @transform_5, window_bounds = array<i64: 16, 16>}]} {
    %c0_i32 = arith.constant 0 : i32
    %0 = arith.cmpi eq, %arg1, %c0_i32 : i32
    %1 = arith.extui %0 : i1 to i32
    %c0_i32_0 = arith.constant 0 : i32
    %2 = arith.cmpi ne, %1, %c0_i32_0 : i32
    scf.if %2 {
      %cst_16 = arith.constant 0.000000e+00 : f32
      %21 = vector.broadcast %cst_16 : f32 to vector<16x16xf32>
      %c0_17 = arith.constant 0 : index
      %c0_18 = arith.constant 0 : index
      %22 = vector.load %arg8[%c0_17, %c0_18] : memref<16x16xf32, #tpu.memory_space<vmem>>, vector<16x16xf32>
      tpu.vector_store %arg8[%c0_17, %c0_18], %21 {strides = array<i32>} : memref<16x16xf32, #tpu.memory_space<vmem>>, vector<16x16xf32>,
    } else {
    }
    %c0 = arith.constant 0 : index
    %c0_1 = arith.constant 0 : index
    %3 = vector.load %arg2[%c0, %c0_1] : memref<16x32xf32, #tpu.memory_space<vmem>>, vector<16x32xf32>
    %4 = arith.truncf %3 : vector<16x32xf32> to vector<16x32xbf16>
    %c0_2 = arith.constant 0 : index
    %c0_3 = arith.constant 0 : index
    %5 = vector.load %arg3[%c0_2, %c0_3] : memref<32x128xbf16, #tpu.memory_space<vmem>>, vector<32x128xbf16>
    %cst = arith.constant dense<0.000000e+00> : vector<16x128xf32>
    %6 = tpu.matmul %4, %5, %cst {dimension_numbers = #tpu.dot_dimension_numbers<[1], [0], [0], [1], [0, 0, 1, 1], [], []>} : vector<16x32xbf16>, vector<32x128xbf16>, vector<16x128xf32> -> vector<16x128xf32>
    %c0_4 = arith.constant 0 : index
    %c0_5 = arith.constant 0 : index
    %7 = vector.load %arg4[%c0_4, %c0_5] : memref<1x128xf32, #tpu.memory_space<vmem>>, vector<1x128xf32>
    %8 = vector.broadcast %7 : vector<1x128xf32> to vector<16x128xf32>
    %9 = arith.addf %6, %8 : vector<16x128xf32>
    %cst_6 = arith.constant 0.000000e+00 : f32
    %10 = vector.broadcast %cst_6 : f32 to vector<16x128xf32>
    %11 = arith.maximumf %9, %10 : vector<16x128xf32>
    %c0_7 = arith.constant 0 : index
    %c0_8 = arith.constant 0 : index
    %12 = vector.load %arg8[%c0_7, %c0_8] : memref<16x16xf32, #tpu.memory_space<vmem>>, vector<16x16xf32>
    %13 = arith.truncf %11 : vector<16x128xf32> to vector<16x128xbf16>
    %c0_9 = arith.constant 0 : index
    %c0_10 = arith.constant 0 : index
    %14 = vector.load %arg5[%c0_9, %c0_10] : memref<128x16xbf16, #tpu.memory_space<vmem>>, vector<128x16xbf16>
    %cst_11 = arith.constant dense<0.000000e+00> : vector<16x16xf32>
    %15 = tpu.matmul %13, %14, %cst_11 {dimension_numbers = #tpu.dot_dimension_numbers<[1], [0], [0], [1], [0, 0, 1, 1], [], []>} : vector<16x128xbf16>, vector<128x16xbf16>, vector<16x16xf32> -> vector<16x16xf32>
    %16 = arith.addf %12, %15 : vector<16x16xf32>
    %c0_12 = arith.constant 0 : index
    %c0_13 = arith.constant 0 : index
    %17 = vector.load %arg8[%c0_12, %c0_13] : memref<16x16xf32, #tpu.memory_space<vmem>>, vector<16x16xf32>
    tpu.vector_store %arg8[%c0_12, %c0_13], %16 {strides = array<i32>} : memref<16x16xf32, #tpu.memory_space<vmem>>, vector<16x16xf32>,
    %c0_i32_14 = arith.constant 0 : i32
    %18 = arith.cmpi eq, %arg1, %c0_i32_14 : i32
    %19 = arith.extui %18 : i1 to i32
    %c0_i32_15 = arith.constant 0 : i32
    %20 = arith.cmpi ne, %19, %c0_i32_15 : i32
    scf.if %20 {
      %c0_16 = arith.constant 0 : index
      %c0_17 = arith.constant 0 : index
      %21 = vector.load %arg8[%c0_16, %c0_17] : memref<16x16xf32, #tpu.memory_space<vmem>>, vector<16x16xf32>
      %c0_18 = arith.constant 0 : index
      %c0_19 = arith.constant 0 : index
      %22 = vector.load %arg6[%c0_18, %c0_19] : memref<1x16xf32, #tpu.memory_space<vmem>>, vector<1x16xf32>
      %23 = vector.broadcast %22 : vector<1x16xf32> to vector<16x16xf32>
      %24 = arith.addf %21, %23 : vector<16x16xf32>
      %c0_20 = arith.constant 0 : index
      %c0_21 = arith.constant 0 : index
      %25 = vector.load %arg7[%c0_20, %c0_21] : memref<16x16xf32, #tpu.memory_space<vmem>>, vector<16x16xf32>
      tpu.vector_store %arg7[%c0_20, %c0_21], %24 {strides = array<i32>} : memref<16x16xf32, #tpu.memory_space<vmem>>, vector<16x16xf32>,
    } else {
    }
    return
  }
  func.func @transform_0(%arg0: i32, %arg1: i32) -> (i32, i32) {
    %c0_i32 = arith.constant 0 : i32
    %c0_i32_0 = arith.constant 0 : i32
    return %arg0, %c0_i32 : i32, i32
  }
  func.func @transform_1(%arg0: i32, %arg1: i32) -> (i32, i32) {
    %c0_i32 = arith.constant 0 : i32
    %c0_i32_0 = arith.constant 0 : i32
    return %c0_i32, %arg1 : i32, i32
  }
  func.func @transform_2(%arg0: i32, %arg1: i32) -> (i32, i32) {
    %c0_i32 = arith.constant 0 : i32
    %c0_i32_0 = arith.constant 0 : i32
    return %c0_i32, %arg1 : i32, i32
  }
  func.func @transform_3(%arg0: i32, %arg1: i32) -> (i32, i32) {
    %c0_i32 = arith.constant 0 : i32
    %c0_i32_0 = arith.constant 0 : i32
    return %arg1, %c0_i32 : i32, i32
  }
  func.func @transform_4(%arg0: i32, %arg1: i32) -> (i32, i32) {
    %c0_i32 = arith.constant 0 : i32
    %c0_i32_0 = arith.constant 0 : i32
    %c0_i32_1 = arith.constant 0 : i32
    return %c0_i32, %c0_i32_0 : i32, i32
  }
  func.func @transform_5(%arg0: i32, %arg1: i32) -> (i32, i32) {
    %c0_i32 = arith.constant 0 : i32
    %c0_i32_0 = arith.constant 0 : i32
    return %arg0, %c0_i32 : i32, i32
  }
}

</mosaic_0001>

<bundles_post_ra>
// kernel: tpu_custom_call.1
= control target key start
LH: loop header
LB: loop body
LE: loop exit
PB: predicated region body
PF: predicated region fallthrough
CT: control target
= control target key end

     0   :  { %v339_v1 = vmov 0.0   ;;  %vm340_vm0 = vmmov 0   ;;  %vm55_vm1 = vcmask 261120   ;;  %s434_s0 = inlined_call_operand.vmem [shape: f32[12,32], index: 0, kind: input, shape index: {}]   ;;  %s435_s1 = inlined_call_operand.vmem [shape: bf16[32,128], index: 1, kind: input, shape index: {}]   ;;  %s436_s2 = inlined_call_operand.vmem [shape: f32[1,128], index: 2, kind: input, shape index: {}]   ;;  %s437_s3 = inlined_call_operand.vmem [shape: bf16[128,16], index: 3, kind: input, shape index: {}]   ;;  %s438_s4 = inlined_call_operand.vmem [shape: f32[1,16], index: 4, kind: input, shape index: {}]   ;;  %s439_s5 = inlined_call_operand.hbm [shape: f32[12,16], index: 5, kind: output, shape index: {}]  }
   0x1   :  { %v305_v0 = vld [vmem:[%s435_s1] sm:$0xff]   ;;  %272 = vmatprep.subr.bf16.mxu0 %v339_v1  ;;  %v306_v2 = vld [vmem:[%s435_s1 + $0x8] sm:$0xff]   ;;  %280 = vmatprep.subr.bf16.mxu1 %v339_v1  ;;  %v309_v8 = vld [vmem:[%s437_s3 + $0x10] sm:$0xff]  }
   0x2   :  { %273 = vmatpush3.bf16.msra.mxu0 %v305_v0  ;;  %276 = vmatprep.mubr.msk.bf16.mxu0 %vm340_vm0, %v339_v1  ;;  %v29_v3 = vld [vmem:[%s434_s0] sm:$0xff]  ;;  %v30_v4 = vld [vmem:[%s434_s0 + $0x8] sm:$0xff] }
   0x3   :  { %274 = vmatprep.subr.bf16.mxu0 %v339_v1  ;;  %v307_v5 = vld [vmem:[%s437_s3] sm:$0xff]   ;;  %296 = vmatprep.mubr.msk.bf16.mxu1 %vm340_vm0, %v339_v1  ;;  %v31_v6 = vpack.c.bf16 %v30_v4, %v29_v3  ;;  %v308_v7 = vld [vmem:[%s437_s3 + $0x8] sm:$0xff]  }
   0x4   :  { %281 = vmatpush3.bf16.msra.mxu1 %v307_v5 }
   0x5   :  { %282 = vmatprep.subr.bf16.mxu1 %v339_v1 }
   0x6   :  { %275 = vmatpush3.bf16.msra.mxu0 %v306_v2 }
   0x8   :  { %283 = vmatpush3.bf16.msra.mxu1 %v308_v7 }
   0x9   :  { %277 = vmatmul.mubr.msk.bf16.vlgmr.msra.gmra.mrb[0].mxu0 %vm55_vm1, %v31_v6  ;;  %284 = vmatprep.subr.bf16.mxu1 %v339_v1 }
   0xa   :  { %10 = vsyncpa [#allocation4], 0  ;;  %v310_v9 = vld [vmem:[%s437_s3 + $0x18] sm:$0xff]   ;;  %v311_v10 = vld [vmem:[%s437_s3 + $0x20] sm:$0xff]   ;;  %vm26_vm2 = vcmask 130048   ;;  %s341_s17 = smov [#allocation3]  }
   0xb   :  { %v312_v11 = vld [vmem:[%s437_s3 + $0x28] sm:$0xff]   ;;  %v313_v12 = vld [vmem:[%s437_s3 + $0x30] sm:$0xff]   ;;  %v314_v13 = vld [vmem:[%s437_s3 + $0x38] sm:$0xff]   ;;  %27 = vst.msk [vmem:[#allocation2] sm:$0xff] %vm26_vm2, %v339_v1  ;;  %s236_s18 = sshll.u32 %s341_s17, 4  ;;  %s237_s18 = int_to_ptr.vmem [resolvable:$true] %s236_s18 }
   0xc   :  { %285 = vmatpush3.bf16.msra.mxu1 %v309_v8  ;;  %28 = vst.msk [vmem:[#allocation2 + $0x8] sm:$0xff] %vm26_vm2, %v339_v1  ;;  %v247_v14 = vld [vmem:[%s436_s2] ss:$0 sm:$0xff]  ;;  %s315_s19 = scalar_lea.vmem %s237_s18, 256  ;;  %p320_p1 = scmp.lt.s32.totalorder %s237_s18, %s237_s18 }
   0xd   :  { %286 = vmatprep.subr.bf16.mxu1 %v339_v1  ;;  %v259_v32 = vld [vmem:[%s438_s4] ss:$0 sm:$0xff]  ;;  %p316_p0 = scmp.ne.s32.totalorder %s237_s18, %s315_s19  ;;  %p321_p2 = scmp.lt.s32.totalorder %s315_s19, %s315_s19 }
   0xf   :  { %p322_p3 = por %p321_p2, %p320_p1 }
  0x10   :  { %287 = vmatpush3.bf16.msra.mxu1 %v310_v9 }
  0x11   :  { %288 = vmatprep.subr.bf16.mxu1 %v339_v1  ;;  %p323_p4 = pnand %p322_p3, %p316_p0 }
  0x12   :  { %v102_v24 = vld [vmem:[#allocation2] sm:$0xff] }
  0x13   :  { %v103_v26 = vld [vmem:[#allocation2 + $0x8] sm:$0xff] }
  0x14   :  { %289 = vmatpush3.bf16.msra.mxu1 %v311_v10 }
  0x15   :  { %290 = vmatprep.subr.bf16.mxu1 %v339_v1 }
  0x18   :  { %291 = vmatpush3.bf16.msra.mxu1 %v312_v11 }
  0x19   :  { %292 = vmatprep.subr.bf16.mxu1 %v339_v1 }
  0x1c   :  { %293 = vmatpush3.bf16.msra.mxu1 %v313_v12 }
  0x1d   :  { %294 = vmatprep.subr.bf16.mxu1 %v339_v1 }
  0x20   :  { %295 = vmatpush3.bf16.msra.mxu1 %v314_v13 }
  0xdc   :  { %v93_v15 = vpop.f32.mrb[0].mxu0 }
  0xdd   :  { %v94_v16 = vadd.f32 %v247_v14, %v93_v15  ;;  %v278_v17 = vpop.f32.mrb[1].mxu0 }
  0xde   :  { %v96_v18 = vpop.f32.mrb[2].mxu0 }
  0xdf   :  { %v97_v19 = vadd.f32 %v247_v14, %v96_v18  ;;  %v279_v20 = vpop.f32.mrb[3].mxu0  ;;  %v100_v21 = vmax.f32 %v94_v16, 0.0 }
  0xe1   :  { %v101_v22 = vmax.f32 %v97_v19, 0.0 }
  0xe3   :  { %v104_v23 = vpack.c.bf16 %v101_v22, %v100_v21 }
  0xe5   :  { %297 = vmatmul.mubr.bf16.vlgmr.msra.gmra.mrb[0].mxu1 %v104_v23 }
 0x1b8   :  { %v203_v25 = vpop.f32.mrb[0].mxu1 }
 0x1b9   :  { %v210_v27 = vadd.f32 %v203_v25, %v102_v24  ;;  %v298_v28 = vpop.f32.mrb[1].mxu1 }
 0x1ba   :  { %v206_v29 = vpop.f32.mrb[2].mxu1 }
 0x1bb   :  { %213 = vst.msk [vmem:[#allocation2] sm:$0xff] %vm26_vm2, %v210_v27  ;;  %v211_v30 = vadd.f32 %v206_v29, %v103_v26  ;;  %v299_v31 = vpop.f32.mrb[3].mxu1 }
 0x1bd   :  { %214 = vst.msk [vmem:[#allocation2 + $0x8] sm:$0xff] %vm26_vm2, %v211_v30 }
 0x1c2   :  { %v218_v33 = vld [vmem:[#allocation2] sm:$0xff] }
 0x1c3   :  { %v227_v34 = vadd.f32 %v259_v32, %v218_v33 }
 0x1c4   :  { %v219_v35 = vld [vmem:[#allocation2 + $0x8] sm:$0xff] }
 0x1c5   :  { %v228_v36 = vadd.f32 %v259_v32, %v219_v35  ;;  %229 = vst.msk [vmem:[#allocation3] sm:$0xff] %vm26_vm2, %v227_v34 }
 0x1c7   :  { %230 = vst.msk [vmem:[#allocation3 + $0x8] sm:$0xff] %vm26_vm2, %v228_v36 }
 0x1c8   :  { %326 = shalt.err (!%p323_p4)
}
 0x1c9   :  { %s327_s21 = scalar_lea.hbm %s439_s5, 256 }
 0x1ca   :  { %p328_p5 = scmp.ne.s32.totalorder %s439_s5, %s327_s21  ;;  %p331_p6 = scmp.lt.u32.totalorder %s327_s21, %s439_s5 }
 0x1cc   :  { %p333_p7 = pnand %p331_p6, %p328_p5 }
 0x1ce   :  { %336 = shalt.err (!%p333_p7)
}
 0x1cf   :  { %s342_s26 = smov 128   ;;  %s343_s27 = smov 8  }
 0x1d0   :  { %242 = dma.vmem_to_hbm [thread:$0]  %s237_s18, 256, %s439_s5, [#allocation4], %s342_s26, %s342_s26, %s343_s27  }
 0x1d1   :  { %337 = dma.done.wait [#allocation4], 256  }
 0x1d2   :  { %338 = vsyncadd [#allocation4], 4294967040 }
 0x1d3   :  { %246 = vsyncpa [#allocation4], 1 }

</bundles_post_ra>
